<compile_context>
chip_gen: v7x
topology: tpu7x:2x2x1
jax: 0.10.0
libtpu: 0.0.40
codegen_flags: <defaults>
</compile_context>

<pallas_src>
import functools

import jax
import jax.numpy as jnp
from jax import lax
from jax.experimental import pallas as pl
from jax.experimental.pallas import tpu as pltpu

LN_EPS = 1e-5      # PyTorch nn.LayerNorm default
NEG_INF = -1e30    # additive mask value for padded keys


# --------------------------------------------------------------------------- #
# Kernel 1: patch embedding (conv-as-matmul), row-tiled with a grid.
# --------------------------------------------------------------------------- #
def _patch_embed_kernel(p_ref, w_ref, b_ref, o_ref):
    # (tM, K)bf16 @ (K, D)bf16 -> f32 acc, + (1, D)f32 bias
    o_ref[...] = (
        jnp.dot(p_ref[...], w_ref[...], preferred_element_type=jnp.float32)
        + b_ref[...]
    )


def patch_embed(patches, w, b, *, tile_m=256):
    M, K = patches.shape
    D = w.shape[1]
    # Row tile: multiple of 8 sublanes, or the full M if it is small.
    tm = M if M <= tile_m else tile_m
    grid = (pl.cdiv(M, tm),)
    return pl.pallas_call(
        _patch_embed_kernel,
        out_shape=jax.ShapeDtypeStruct((M, D), jnp.float32),
        grid=grid,
        in_specs=[
            pl.BlockSpec((tm, K), lambda i: (i, 0)),
            pl.BlockSpec((K, D), lambda i: (0, 0)),
            pl.BlockSpec((1, D), lambda i: (0, 0)),
        ],
        out_specs=pl.BlockSpec((tm, D), lambda i: (i, 0)),
        compiler_params=pltpu.CompilerParams(
            dimension_semantics=("parallel",)
        ),
    )(patches, w, b)


# --------------------------------------------------------------------------- #
# Kernel 2: one full Transformer encoder block (pre-LN MSA + pre-LN MLP,
# both with residuals), one batch element per grid step.
# --------------------------------------------------------------------------- #
def _layer_norm(x, gamma, beta):
    mu = jnp.mean(x, axis=-1, keepdims=True)
    var = jnp.mean((x - mu) ** 2, axis=-1, keepdims=True)
    return (x - mu) * lax.rsqrt(var + LN_EPS) * gamma + beta


def _encoder_block_kernel(
    x_ref,
    ln1g_ref, ln1b_ref, wqkv_ref, bqkv_ref, wo_ref, bo_ref,
    ln2g_ref, ln2b_ref, w1_ref, b1_ref, w2_ref, b2_ref,
    o_ref,
    *,
    num_heads,
    seq_len,
):
    x = x_ref[0]                       # (Sp, D) f32, Sp is the padded sequence
    Sp, D = x.shape
    H = num_heads
    Dh = D // H
    scale = 1.0 / (Dh ** 0.5)

    # ---- Multi-head self-attention sub-block: x = MSA(LN(x)) + x -------------
    xn = _layer_norm(x, ln1g_ref[...], ln1b_ref[...])          # f32
    qkv = (
        jnp.dot(xn.astype(jnp.bfloat16), wqkv_ref[...],
                preferred_element_type=jnp.float32)
        + bqkv_ref[...]
    )                                                           # (Sp, 3D) f32

    # Key mask for padded sequence positions (hoisted out of the head loop).
    if seq_len < Sp:
        kpos = lax.broadcasted_iota(jnp.int32, (Sp, Sp), 1)
        kmask = kpos < seq_len                                  # (Sp, Sp) bool
    else:
        kmask = None

    # Heads: statically unrolled. No kh.T (dot_general contracts last dims)
    # and no concatenate (accumulate through per-head Wo row slices).
    msa_acc = jnp.zeros((Sp, D), jnp.float32)
    for h in range(H):
        qh = qkv[:, h * Dh:(h + 1) * Dh].astype(jnp.bfloat16)
        kh = qkv[:, D + h * Dh:D + (h + 1) * Dh].astype(jnp.bfloat16)
        vh = qkv[:, 2 * D + h * Dh:2 * D + (h + 1) * Dh].astype(jnp.bfloat16)

        s = lax.dot_general(
            qh, kh, (((1,), (1,)), ((), ())),
            preferred_element_type=jnp.float32,
        ) * scale                                               # (Sp, Sp) f32
        if kmask is not None:
            s = jnp.where(kmask, s, NEG_INF)
        s = s - jnp.max(s, axis=-1, keepdims=True)
        p = jnp.exp(s)
        p = p * pl.reciprocal(jnp.sum(p, axis=-1, keepdims=True), approx=True)

        head = jnp.dot(p.astype(jnp.bfloat16), vh,
                       preferred_element_type=jnp.float32)      # (Sp, Dh) f32
        msa_acc = msa_acc + jnp.dot(
            head.astype(jnp.bfloat16),
            wo_ref[pl.ds(h * Dh, Dh), :],
            preferred_element_type=jnp.float32,
        )

    x = x + msa_acc + bo_ref[...]

    # ---- MLP sub-block: x = MLP(LN(x)) + x -----------------------------------
    xn = _layer_norm(x, ln2g_ref[...], ln2b_ref[...])
    h1 = (
        jnp.dot(xn.astype(jnp.bfloat16), w1_ref[...],
                preferred_element_type=jnp.float32)
        + b1_ref[...]
    )
    h1 = jax.nn.gelu(h1, approximate=False)                     # exact GELU
    mlp = (
        jnp.dot(h1.astype(jnp.bfloat16), w2_ref[...],
                preferred_element_type=jnp.float32)
        + b2_ref[...]
    )
    o_ref[0] = x + mlp


def encoder_block(x, layer_params, num_heads, seq_len):
    B, Sp, D = x.shape
    weights = [
        layer_params["ln1_g"], layer_params["ln1_b"],
        layer_params["wqkv"], layer_params["bqkv"],
        layer_params["wo"], layer_params["bo"],
        layer_params["ln2_g"], layer_params["ln2_b"],
        layer_params["w1"], layer_params["b1"],
        layer_params["w2"], layer_params["b2"],
    ]
    in_specs = [pl.BlockSpec((1, Sp, D), lambda b: (b, 0, 0))]
    for w in weights:
        in_specs.append(pl.BlockSpec(w.shape, lambda b, n=w.ndim: (0,) * n))
    kernel = functools.partial(
        _encoder_block_kernel, num_heads=num_heads, seq_len=seq_len
    )
    return pl.pallas_call(
        kernel,
        out_shape=jax.ShapeDtypeStruct((B, Sp, D), jnp.float32),
        grid=(B,),
        in_specs=in_specs,
        out_specs=pl.BlockSpec((1, Sp, D), lambda b: (b, 0, 0)),
        compiler_params=pltpu.CompilerParams(
            dimension_semantics=("parallel",),
            vmem_limit_bytes=64 * 1024 * 1024,
        ),
    )(x, *weights)


# --------------------------------------------------------------------------- #
# Kernel 3: classifier head (LayerNorm + Linear) on the class token.
# Output is computed lane-dense (classes padded to a multiple of 128).
# --------------------------------------------------------------------------- #
def _classifier_kernel(x_ref, g_ref, b_ref, w_ref, bias_ref, o_ref):
    xn = _layer_norm(x_ref[...], g_ref[...], b_ref[...])
    o_ref[...] = (
        jnp.dot(xn.astype(jnp.bfloat16), w_ref[...],
                preferred_element_type=jnp.float32)
        + bias_ref[...]
    )


def classifier(x_cls, g, b, w, bias):
    B, D = x_cls.shape
    C = w.shape[1]
    Cp = ((C + 127) // 128) * 128
    if Cp != C:
        w = jnp.pad(w, ((0, 0), (0, Cp - C)))
        bias = jnp.pad(bias, ((0, 0), (0, Cp - C)))
    out = pl.pallas_call(
        _classifier_kernel,
        out_shape=jax.ShapeDtypeStruct((B, Cp), jnp.float32),
        in_specs=[
            pl.BlockSpec((B, D), lambda: (0, 0)),
            pl.BlockSpec((1, D), lambda: (0, 0)),
            pl.BlockSpec((1, D), lambda: (0, 0)),
            pl.BlockSpec((D, Cp), lambda: (0, 0)),
            pl.BlockSpec((1, Cp), lambda: (0, 0)),
        ],
        out_specs=pl.BlockSpec((B, Cp), lambda: (0, 0)),
    )(x_cls, g, b, w, bias)
    return out[:, :C]


# --------------------------------------------------------------------------- #
# Glue: im2col patch extraction (matches Conv2d(k=P, stride=P) semantics)
# --------------------------------------------------------------------------- #
def extract_patches(x, patch_size):
    B, C, H, W = x.shape
    P = patch_size
    nH, nW = H // P, W // P
    x = x.reshape(B, C, nH, P, nW, P)
    x = x.transpose(0, 2, 4, 1, 3, 5)          # (B, nH, nW, C, P, P)
    return x.reshape(B, nH * nW, C * P * P)    # (B, N, K)


# --------------------------------------------------------------------------- #
# Parameter init (deterministic, synthetic). Matmul weights stored in bf16,
# LayerNorm params / biases / embeddings in f32.
# --------------------------------------------------------------------------- #
def init_vit_params(key, *, in_channels, patch_size, embedding_dim, mlp_size,
                    num_layers, num_heads, num_classes, num_patches):
    D, M = embedding_dim, mlp_size
    K = in_channels * patch_size * patch_size
    keys = jax.random.split(key, 8 + num_layers)

    def nrm(k, shape, s=0.02, dtype=jnp.bfloat16):
        return (jax.random.normal(k, shape, jnp.float32) * s).astype(dtype)

    params = {
        "class_embedding": nrm(keys[0], (1, 1, D), 1.0, jnp.float32),
        "position_embedding": nrm(keys[1], (1, num_patches + 1, D), 1.0,
                                  jnp.float32),
        "patch_w": nrm(keys[2], (K, D)),          # (C*P*P, D) bf16
        "patch_b": jnp.zeros((1, D), jnp.float32),
        "cls_g": jnp.ones((1, D), jnp.float32),
        "cls_b": jnp.zeros((1, D), jnp.float32),
        "cls_w": nrm(keys[3], (D, num_classes)),
        "cls_bias": jnp.zeros((1, num_classes), jnp.float32),
        "layers": [],
    }
    for l in range(num_layers):
        lk = jax.random.split(keys[8 + l], 4)
        params["layers"].append({
            "ln1_g": jnp.ones((1, D), jnp.float32),
            "ln1_b": jnp.zeros((1, D), jnp.float32),
            "wqkv": nrm(lk[0], (D, 3 * D)),
            "bqkv": jnp.zeros((1, 3 * D), jnp.float32),
            "wo": nrm(lk[1], (D, D)),
            "bo": jnp.zeros((1, D), jnp.float32),
            "ln2_g": jnp.ones((1, D), jnp.float32),
            "ln2_b": jnp.zeros((1, D), jnp.float32),
            "w1": nrm(lk[2], (D, M)),
            "b1": jnp.zeros((1, M), jnp.float32),
            "w2": nrm(lk[3], (M, D)),
            "b2": jnp.zeros((1, D), jnp.float32),
        })
    return params


# --------------------------------------------------------------------------- #
# Full forward pass
# --------------------------------------------------------------------------- #
def vit_forward(x, params, *, patch_size, num_heads):
    B = x.shape[0]
    D = params["patch_w"].shape[1]

    # patch embedding (Conv2d-as-matmul kernel, row-tiled)
    patches = extract_patches(x, patch_size)                 # (B, N, K)
    _, N, K = patches.shape
    emb = patch_embed(
        patches.reshape(B * N, K).astype(jnp.bfloat16),
        params["patch_w"], params["patch_b"],
    )
    emb = emb.reshape(B, N, D)

    # class token + position embedding (cheap elementwise glue)
    cls = jnp.broadcast_to(params["class_embedding"], (B, 1, D))
    h = jnp.concatenate([cls, emb], axis=1) + params["position_embedding"]
    # embedding dropout: identity at inference

    # pad sequence to a multiple of 8 sublanes; padded keys are masked in-kernel
    S = N + 1
    Sp = ((S + 7) // 8) * 8
    if Sp != S:
        h = jnp.pad(h, ((0, 0), (0, Sp - S), (0, 0)))

    # transformer encoder stack (one Pallas kernel call per layer)
    # TODO(synk): cross-pallas_call prefetch of next layer's weights (DMA futures).
    for layer_params in params["layers"]:
        h = encoder_block(h, layer_params, num_heads, S)

    # classifier head on class token (row 0 is always a valid, unpadded row)
    return classifier(h[:, 0], params["cls_g"], params["cls_b"],
                      params["cls_w"], params["cls_bias"])


# --------------------------------------------------------------------------- #
if __name__ == "__main__":
    # small, forward-consistent hyperparameters
    B = 2
    IN_CHANNELS = 3
    IMG_SIZE = 16
    PATCH_SIZE = 8
    NUM_LAYERS = 2
    EMBED_DIM = 32
    MLP_SIZE = 64
    NUM_HEADS = 4
    NUM_CLASSES = 10
    NUM_PATCHES = (IMG_SIZE * IMG_SIZE) // (PATCH_SIZE ** 2)

    key = jax.random.PRNGKey(0)
    pkey, xkey = jax.random.split(key)
    params = init_vit_params(
        pkey,
        in_channels=IN_CHANNELS, patch_size=PATCH_SIZE,
        embedding_dim=EMBED_DIM, mlp_size=MLP_SIZE,
        num_layers=NUM_LAYERS, num_heads=NUM_HEADS,
        num_classes=NUM_CLASSES, num_patches=NUM_PATCHES,
    )

    x = jax.random.normal(xkey, (B, IN_CHANNELS, IMG_SIZE, IMG_SIZE),
                          jnp.float32)

    out = vit_forward(x, params, patch_size=PATCH_SIZE, num_heads=NUM_HEADS)
    out = jax.block_until_ready(out)
    assert out.shape == (B, NUM_CLASSES), out.shape
    assert bool(jnp.all(jnp.isfinite(out)))
    print("KERNEL_OK")
</pallas_src>

<mosaic_0001>
module attributes {stable_mosaic.version = 11 : i64} {
  func.func @_patch_embed_kernel(%arg0: i32, %arg1: memref<8x192xbf16, #tpu.memory_space<vmem>>, %arg2: memref<192x32xbf16, #tpu.memory_space<vmem>>, %arg3: memref<1x32xf32, #tpu.memory_space<vmem>>, %arg4: memref<8x32xf32, #tpu.memory_space<vmem>>) attributes {dimension_semantics = [#tpu.dimension_semantics<parallel>], iteration_bounds = array<i64: 1>, scalar_prefetch = 0 : i64, scratch_operands = 0 : i64, tpu.core_type = #tpu.core_type<tc>, window_params = [{transform_indices = @transform_0, window_bounds = array<i64: 8, 192>}, {pipeline_mode = #tpu.pipeline_mode<synchronous>, transform_indices = @transform_1, window_bounds = array<i64: 192, 32>}, {pipeline_mode = #tpu.pipeline_mode<synchronous>, transform_indices = @transform_2, window_bounds = array<i64: 1, 32>}, {transform_indices = @transform_3, window_bounds = array<i64: 8, 32>}]} {
    %c0 = arith.constant 0 : index
    %c0_0 = arith.constant 0 : index
    %0 = vector.load %arg1[%c0, %c0_0] : memref<8x192xbf16, #tpu.memory_space<vmem>>, vector<8x192xbf16>
    %c0_1 = arith.constant 0 : index
    %c0_2 = arith.constant 0 : index
    %1 = vector.load %arg2[%c0_1, %c0_2] : memref<192x32xbf16, #tpu.memory_space<vmem>>, vector<192x32xbf16>
    %cst = arith.constant dense<0.000000e+00> : vector<8x32xf32>
    %2 = tpu.matmul %0, %1, %cst {dimension_numbers = #tpu.dot_dimension_numbers<[1], [0], [0], [1], [0, 0, 1, 1], [], []>} : vector<8x192xbf16>, vector<192x32xbf16>, vector<8x32xf32> -> vector<8x32xf32>
    %c0_3 = arith.constant 0 : index
    %c0_4 = arith.constant 0 : index
    %3 = vector.load %arg3[%c0_3, %c0_4] : memref<1x32xf32, #tpu.memory_space<vmem>>, vector<1x32xf32>
    %4 = vector.broadcast %3 : vector<1x32xf32> to vector<8x32xf32>
    %5 = arith.addf %2, %4 : vector<8x32xf32>
    %c0_5 = arith.constant 0 : index
    %c0_6 = arith.constant 0 : index
    %6 = vector.load %arg4[%c0_5, %c0_6] : memref<8x32xf32, #tpu.memory_space<vmem>>, vector<8x32xf32>
    tpu.vector_store %arg4[%c0_5, %c0_6], %5 {strides = array<i32>} : memref<8x32xf32, #tpu.memory_space<vmem>>, vector<8x32xf32>,
    return
  }
  func.func @transform_0(%arg0: i32) -> (i32, i32) {
    %c0_i32 = arith.constant 0 : i32
    %c0_i32_0 = arith.constant 0 : i32
    return %arg0, %c0_i32 : i32, i32
  }
  func.func @transform_1(%arg0: i32) -> (i32, i32) {
    %c0_i32 = arith.constant 0 : i32
    %c0_i32_0 = arith.constant 0 : i32
    %c0_i32_1 = arith.constant 0 : i32
    return %c0_i32, %c0_i32_0 : i32, i32
  }
  func.func @transform_2(%arg0: i32) -> (i32, i32) {
    %c0_i32 = arith.constant 0 : i32
    %c0_i32_0 = arith.constant 0 : i32
    %c0_i32_1 = arith.constant 0 : i32
    return %c0_i32, %c0_i32_0 : i32, i32
  }
  func.func @transform_3(%arg0: i32) -> (i32, i32) {
    %c0_i32 = arith.constant 0 : i32
    %c0_i32_0 = arith.constant 0 : i32
    return %arg0, %c0_i32 : i32, i32
  }
}

</mosaic_0001>

<bundles_post_ra>
// kernel: tpu_custom_call.1
= control target key start
LH: loop header
LB: loop body
LE: loop exit
PB: predicated region body
PF: predicated region fallthrough
CT: control target
= control target key end

     0   :  { %v242_v1 = vmov 0   ;;  %vm126_vm0 = vcmask 523264   ;;  %s318_s0 = inlined_call_operand.vmem [shape: bf16[8,192], index: 0, kind: input, shape index: {}]   ;;  %s319_s1 = inlined_call_operand.vmem [shape: bf16[192,32], index: 1, kind: input, shape index: {}]   ;;  %s320_s2 = inlined_call_operand.vmem [shape: f32[1,32], index: 2, kind: input, shape index: {}]   ;;  %s321_s3 = inlined_call_operand.hbm [shape: f32[8,32], index: 3, kind: output, shape index: {}]  }
   0x1   :  { %v204_v0 = vld [vmem:[%s319_s1] sm:$0xff]   ;;  %130 = vmatprep.subr.bf16.mxu0 %v242_v1  ;;  %v205_v2 = vld [vmem:[%s319_s1 + $0x8] sm:$0xff]   ;;  %v206_v3 = vld [vmem:[%s319_s1 + $0x10] sm:$0xff]  }
   0x2   :  { %131 = vmatpush1.bf16.msra.mxu0 %v204_v0  ;;  %v207_v4 = vld [vmem:[%s319_s1 + $0x18] sm:$0xff]   ;;  %v16_v5 = vld [vmem:[%s318_s0] sm:$0xff] }
   0x3   :  { %132 = vmatprep.subr.bf16.mxu0 %v242_v1 }
   0x6   :  { %133 = vmatpush1.bf16.msra.mxu0 %v205_v2 }
   0x7   :  { %134 = vmatprep.subr.bf16.mxu0 %v242_v1 }
   0xa   :  { %135 = vmatpush1.bf16.msra.mxu0 %v206_v3 }
   0xb   :  { %136 = vmatprep.subr.bf16.mxu0 %v242_v1 }
   0xc   :  { %8 = vsyncpa [#allocation3], 0  ;;  %v188_v6 = vcombine.high %v16_v5, %v16_v5  ;;  %v208_v7 = vld [vmem:[%s319_s1 + $0x20] sm:$0xff]   ;;  %v209_v8 = vld [vmem:[%s319_s1 + $0x28] sm:$0xff]   ;;  %v187_v15 = vcombine.low %v16_v5, %v16_v5  ;;  %s243_s12 = smov [#allocation2]   ;;  %vm170_vm1 = vcmask 261120  }
   0xd   :  { %v210_v9 = vld [vmem:[%s319_s1 + $0x30] sm:$0xff]   ;;  %v211_v10 = vld [vmem:[%s319_s1 + $0x38] sm:$0xff]   ;;  %v212_v11 = vld [vmem:[%s319_s1 + $0x40] sm:$0xff]   ;;  %s178_s13 = sshll.u32 %s243_s12, 4  ;;  %s179_s13 = int_to_ptr.vmem [resolvable:$true] %s178_s13 }
   0xe   :  { %137 = vmatpush1.bf16.msra.mxu0 %v207_v4  ;;  %201 = vmatprep.mubr.msk.bf16.mxu0 %vm126_vm0, %v188_v6  ;;  %v213_v12 = vld [vmem:[%s319_s1 + $0x48] sm:$0xff]   ;;  %v214_v13 = vld [vmem:[%s319_s1 + $0x50] sm:$0xff]   ;;  %v215_v14 = vld [vmem:[%s319_s1 + $0x58] sm:$0xff]   ;;  %s218_s14 = scalar_lea.vmem %s179_s13, 128  ;;  %p223_p1 = scmp.lt.s32.totalorder %s179_s13, %s179_s13 }
   0xf   :  { %138 = vmatprep.subr.bf16.mxu0 %v242_v1  ;;  %v186_v16 = vld [vmem:[%s320_s2] ss:$0 sm:$0xff]  ;;  %p219_p0 = scmp.ne.s32.totalorder %s179_s13, %s218_s14  ;;  %p224_p2 = scmp.lt.s32.totalorder %s218_s14, %s218_s14 }
  0x11   :  { %p225_p3 = por %p224_p2, %p223_p1 }
  0x12   :  { %139 = vmatpush1.bf16.msra.mxu0 %v208_v7 }
  0x13   :  { %140 = vmatprep.subr.bf16.mxu0 %v242_v1  ;;  %p226_p4 = pnand %p225_p3, %p219_p0 }
  0x16   :  { %141 = vmatpush1.bf16.msra.mxu0 %v209_v8 }
  0x17   :  { %142 = vmatprep.subr.bf16.mxu0 %v242_v1 }
  0x1a   :  { %143 = vmatpush1.bf16.msra.mxu0 %v210_v9 }
  0x1b   :  { %144 = vmatprep.subr.bf16.mxu0 %v242_v1 }
  0x1e   :  { %145 = vmatpush1.bf16.msra.mxu0 %v211_v10 }
  0x1f   :  { %146 = vmatprep.subr.bf16.mxu0 %v242_v1 }
  0x22   :  { %147 = vmatpush1.bf16.msra.mxu0 %v212_v11 }
  0x23   :  { %148 = vmatprep.subr.bf16.mxu0 %v242_v1 }
  0x26   :  { %149 = vmatpush1.bf16.msra.mxu0 %v213_v12 }
  0x27   :  { %150 = vmatprep.subr.bf16.mxu0 %v242_v1 }
  0x2a   :  { %151 = vmatpush1.bf16.msra.mxu0 %v214_v13 }
  0x2b   :  { %152 = vmatprep.subr.bf16.mxu0 %v242_v1 }
  0x2e   :  { %153 = vmatpush1.bf16.msra.mxu0 %v215_v14 }
  0x31   :  { %163 = vmatmul.mubr.bf16.vlgmr.msra.gmra.mrb[0].mxu0 %v187_v15 }
 0x104   :  { %v164_v17 = vpop.f32.mrb[0].mxu0 }
 0x105   :  { %v165_v18 = vadd.f32 %v186_v16, %v164_v17  ;;  %v166_v19 = vpop.f32.mrb[1].mxu0 }
 0x106   :  { %v167_v20 = vpop.f32.mrb[2].mxu0 }
 0x107   :  { %v168_v21 = vpop.f32.mrb[3].mxu0  ;;  %171 = vst.msk [vmem:[#allocation2] sm:$0xff] %vm170_vm1, %v165_v18 }
 0x108   :  { %229 = shalt.err (!%p226_p4)
}
 0x109   :  { %s230_s2 = scalar_lea.hbm %s321_s3, 128 }
 0x10a   :  { %p231_p5 = scmp.ne.s32.totalorder %s321_s3, %s230_s2  ;;  %p234_p6 = scmp.lt.u32.totalorder %s230_s2, %s321_s3 }
 0x10c   :  { %p236_p7 = pnand %p234_p6, %p231_p5 }
 0x10e   :  { %239 = shalt.err (!%p236_p7)
}
 0x10f   :  { %181 = dma.vmem_to_hbm [thread:$0]  %s179_s13, 128, %s321_s3, [#allocation3]  }
 0x110   :  { %240 = dma.done.wait [#allocation3], 128  }
 0x111   :  { %241 = vsyncadd [#allocation3], 4294967168 }
 0x112   :  { %185 = vsyncpa [#allocation3], 1 }

</bundles_post_ra>
